<compile_context>
chip_gen: v7x
topology: tpu7x:2x2x1
jax: 0.10.0
libtpu: 0.0.40
codegen_flags: <defaults>
</compile_context>

<pallas_src>
import math

import jax
import jax.numpy as jnp
from jax import lax
from jax.experimental import pallas as pl
from jax.experimental.pallas import tpu as pltpu

SIZE_IN = 16
SIZE_MIDDLE = 16
SIZE_OUT = 6


# ----------------------------------------------------------------------------
# Kernel
# ----------------------------------------------------------------------------
def esn_seq_kernel(xs_ref, x10_ref, x20_ref, wa_ref, wb_ref, wc_ref, bc_ref,
                   fc_ref, outs_ref, x1_fin_ref, x2_fin_ref, x1_sc, x2_sc):
    """Process one chunk of TS timesteps entirely in-kernel.

    States are carried in vregs via the fori_loop carry; the chunk-boundary
    carry lives in VMEM scratch (x1_sc / x2_sc).  This is ONLY correct because
    the time grid axis is 'arbitrary' (serial) -- do NOT mark it 'parallel'
    and do NOT shard it across cores.
    """
    M = SIZE_MIDDLE
    f32 = jnp.float32
    c = pl.program_id(0)
    TS = xs_ref.shape[0]
    B = xs_ref.shape[1]

    @pl.when(c == 0)
    def _init():
        x1_sc[...] = x10_ref[...]
        x2_sc[...] = x20_ref[...]

    # Resident weights -> vregs once per chunk (constant index_map => no
    # per-chunk re-DMA; verified on the previous version's lowering).
    wa = wa_ref[...]                 # (16, 32)  drives x  -> [x1_new | x2_new]
    wb = wb_ref[...]                 # (16, 32)  drives x1 -> [x1_new | x2_new]
    wc = wc_ref[...]                 # (16, 32)  drives x2 -> [x1_new | x2_new]
    fc = fc_ref[...]                 # (16, 6)
    # Hoist the (1,32) -> (B,32) bias broadcast out of the unrolled loop
    # (JAX does not CSE broadcast_in_dim).
    bias = jnp.broadcast_to(bc_ref[...], (B, 2 * M))

    def step(i, carry):
        x1, x2 = carry
        xt = xs_ref[i]                                            # (B, 16)
        # Fused update: acc = [x1_new | x2_new]; the x1_new->x2_new serial
        # matmul was folded into wa/wb/wc/bc on the host.
        acc = (jnp.dot(xt, wa, preferred_element_type=f32)
               + jnp.dot(x1, wb, preferred_element_type=f32)
               + jnp.dot(x2, wc, preferred_element_type=f32)
               + bias)
        x1_t = jnp.tanh(acc[:, 0:M])
        x2_t = jnp.tanh(acc[:, M:2 * M])
        # per-step store goes to the chunk's VMEM output block; HBM writeback
        # happens once per chunk.
        outs_ref[i] = jnp.dot(x2_t, fc, preferred_element_type=f32)
        return (x1_t, x2_t)

    x1_f, x2_f = lax.fori_loop(0, TS, step, (x1_sc[...], x2_sc[...]),
                               unroll=True)

    # carry states to the next chunk
    x1_sc[...] = x1_f
    x2_sc[...] = x2_f

    @pl.when(c == pl.num_programs(0) - 1)
    def _finalize():
        x1_fin_ref[...] = x1_f
        x2_fin_ref[...] = x2_f


# ----------------------------------------------------------------------------
# Host-side packing + wrappers
# ----------------------------------------------------------------------------
def pack_params(params, binde1, binde2, binde3, binde4):
    """Fold the (constant) binde masks into the weights, then fold the second
    (x2-producing) matmul into the first so one matmul group per step yields
    [x1_new | x2_new].  Done once outside the kernel.

      x1_new = x@w_in + x1@(w_res1*b1) + x2@(w_res21*b2) + bsum1
      x2_new = x1_new@(w_res12*b3) + x2@(w_res2*b4) + bsum2
             = x@(w_in@W12) + x1@(w_res1m@W12) + x2@(w_res21m@W12 + w_res2m)
               + (bsum1@W12 + bsum2)
    """
    w_res1m = params["w_res1"] * binde1
    w_res21m = params["w_res21"] * binde2
    w_res12m = params["w_res12"] * binde3
    w_res2m = params["w_res2"] * binde4

    b1 = (params["b_in"] + params["b_x1"] + params["b_res21"]).reshape(1, -1)
    b2 = (params["b_res12"] + params["b_x2"]).reshape(1, -1)

    wa = jnp.concatenate([params["w_in"], params["w_in"] @ w_res12m], axis=1)
    wb = jnp.concatenate([w_res1m, w_res1m @ w_res12m], axis=1)
    wc = jnp.concatenate([w_res21m, w_res21m @ w_res12m + w_res2m], axis=1)
    bc = jnp.concatenate([b1, b1 @ w_res12m + b2], axis=1)
    return {"wa": wa, "wb": wb, "wc": wc, "bc": bc, "fc": params["fc"]}


def binde_esn_run(xs, x1_0, x2_0, packed, chunk=None):
    """Run T recurrent steps in ONE pallas_call.
    xs: (T, B, 16). Returns (outs (T,B,6), x1_final (B,16), x2_final (B,16))."""
    T, B, _ = xs.shape
    M = SIZE_MIDDLE

    if chunk is None:
        # One chunk unless the per-chunk xs/outs blocks would blow VMEM.
        # Keep double-buffered (xs + outs) f32 under ~4 MiB so the same choice
        # is safe on v7x (64 MiB physical / 32 MiB default scoped limit) as
        # well as v5e/v6e.
        budget_elems = (4 << 20) // 4
        per_step = 2 * B * (SIZE_IN + SIZE_OUT)
        chunk = max(1, min(T, budget_elems // max(per_step, 1)))
        while T % chunk != 0:
            chunk -= 1
    assert T % chunk == 0, "T must be divisible by chunk"
    n_chunks = T // chunk
    const = lambda c: (0, 0)

    # TODO(synk): for large B on v7x, shard the batch across the two
    # TensorCores (core-parallel leading axis); pure overhead at tiny B.
    return pl.pallas_call(
        esn_seq_kernel,
        out_shape=(
            jax.ShapeDtypeStruct((T, B, SIZE_OUT), jnp.float32),
            jax.ShapeDtypeStruct((B, M), jnp.float32),
            jax.ShapeDtypeStruct((B, M), jnp.float32),
        ),
        grid=(n_chunks,),
        in_specs=[
            pl.BlockSpec((chunk, B, SIZE_IN), lambda c: (c, 0, 0)),  # xs chunk
            pl.BlockSpec((B, M), const),                             # x1_0
            pl.BlockSpec((B, M), const),                             # x2_0
            pl.BlockSpec((M, 2 * M), const),                         # wa (resident)
            pl.BlockSpec((M, 2 * M), const),                         # wb (resident)
            pl.BlockSpec((M, 2 * M), const),                         # wc (resident)
            pl.BlockSpec((1, 2 * M), const),                         # bc
            pl.BlockSpec((M, SIZE_OUT), const),                      # fc (resident)
        ],
        out_specs=(
            pl.BlockSpec((chunk, B, SIZE_OUT), lambda c: (c, 0, 0)),  # outs chunk
            pl.BlockSpec((B, M), const),                              # x1 final
            pl.BlockSpec((B, M), const),                              # x2 final
        ),
        scratch_shapes=[
            pltpu.VMEM((B, M), jnp.float32),   # x1 carry across chunks
            pltpu.VMEM((B, M), jnp.float32),   # x2 carry across chunks
        ],
        # MUST stay serial: the state carry lives in VMEM scratch across grid
        # iterations.  Never change this to "parallel".
        compiler_params=pltpu.CompilerParams(
            dimension_semantics=("arbitrary",)),
    )(xs, x1_0, x2_0, packed["wa"], packed["wb"], packed["wc"],
      packed["bc"], packed["fc"])


def binde_esn_forward(x, x1, x2, packed):
    """Single forward step (matches the PyTorch module forward), routed through
    the sequence kernel with T = chunk = 1.
    Returns (out (B,6), x1_new (B,16), x2_new (B,16))."""
    outs, x1_n, x2_n = binde_esn_run(x[jnp.newaxis], x1, x2, packed, chunk=1)
    return outs[0], x1_n, x2_n


# ----------------------------------------------------------------------------
# Init + plain-JAX reference (mirrors the PyTorch math exactly, un-fused)
# ----------------------------------------------------------------------------
def init_params(key):
    """kaiming_uniform_(a=sqrt(5)) => bound = 1/sqrt(fan_in); same for biases."""
    keys = jax.random.split(key, 11)

    def w(k, shape):
        bound = 1.0 / math.sqrt(shape[1])
        return jax.random.uniform(k, shape, jnp.float32, -bound, bound)

    def b(k, fan_in, shape):
        bound = 1.0 / math.sqrt(fan_in)
        return jax.random.uniform(k, shape, jnp.float32, -bound, bound)

    M, O = SIZE_MIDDLE, SIZE_OUT
    return {
        "w_in":    w(keys[0], (M, M)),
        "w_res1":  w(keys[1], (M, M)),
        "w_res12": w(keys[2], (M, M)),
        "w_res2":  w(keys[3], (M, M)),
        "w_res21": w(keys[4], (M, M)),
        "fc":      w(keys[5], (M, O)),
        "b_in":    b(keys[6],  M, (M,)),
        "b_x1":    b(keys[7],  M, (M,)),
        "b_res12": b(keys[8],  M, (M,)),
        "b_x2":    b(keys[9],  M, (M,)),
        "b_res21": b(keys[10], M, (M,)),
    }


def reference_forward(x, x1, x2, p, b1, b2, b3, b4):
    f32 = jnp.float32
    x1n = (jnp.dot(x, p["w_in"], preferred_element_type=f32) + p["b_in"]
           + jnp.dot(x1, p["w_res1"] * b1, preferred_element_type=f32) + p["b_x1"]
           + jnp.dot(x2, p["w_res21"] * b2, preferred_element_type=f32) + p["b_res21"])
    x2n = (jnp.dot(x1n, p["w_res12"] * b3, preferred_element_type=f32) + p["b_res12"]
           + jnp.dot(x2, p["w_res2"] * b4, preferred_element_type=f32) + p["b_x2"])
    x1t = jnp.tanh(x1n)
    x2t = jnp.tanh(x2n)
    return jnp.dot(x2t, p["fc"], preferred_element_type=f32), x1t, x2t


# ----------------------------------------------------------------------------
# Main
# ----------------------------------------------------------------------------
if __name__ == "__main__":
    key = jax.random.PRNGKey(0)
    k_params, k_x, k_xs, k_b1, k_b2, k_b3, k_b4 = jax.random.split(key, 7)

    batch = 2
    T = 8
    chunk = 4          # exercises the cross-chunk state carry (grid = (2,))
    M = SIZE_MIDDLE
    params = init_params(k_params)

    binde1 = jax.random.bernoulli(k_b1, 0.5, (M, M)).astype(jnp.float32)
    binde2 = jax.random.bernoulli(k_b2, 0.5, (M, M)).astype(jnp.float32)
    binde3 = jax.random.bernoulli(k_b3, 0.5, (M, M)).astype(jnp.float32)
    binde4 = jax.random.bernoulli(k_b4, 0.5, (M, M)).astype(jnp.float32)

    packed = pack_params(params, binde1, binde2, binde3, binde4)

    x = jax.random.normal(k_x, (batch, SIZE_IN), jnp.float32)
    x1_0 = jnp.zeros((batch, M), jnp.float32)   # initHidden()
    x2_0 = jnp.zeros((batch, M), jnp.float32)

    tol = dict(atol=1e-4, rtol=1e-4)

    # --- single-step (module forward), routed through the seq kernel --------
    out1, x1_a, x2_a = binde_esn_forward(x, x1_0, x2_0, packed)
    jax.block_until_ready((out1, x1_a, x2_a))

    r_out1, r_x1a, r_x2a = reference_forward(x, x1_0, x2_0, params,
                                             binde1, binde2, binde3, binde4)
    assert out1.shape == (batch, SIZE_OUT)
    assert x1_a.shape == (batch, M) and x2_a.shape == (batch, M)
    assert jnp.allclose(out1, r_out1, **tol)
    assert jnp.allclose(x1_a, r_x1a, **tol) and jnp.allclose(x2_a, r_x2a, **tol)

    # --- multi-step: whole recurrence in ONE pallas_call, chunked grid ------
    xs = jax.random.normal(k_xs, (T, batch, SIZE_IN), jnp.float32)
    outs, x1_f, x2_f = binde_esn_run(xs, x1_0, x2_0, packed, chunk=chunk)
    jax.block_until_ready((outs, x1_f, x2_f))

    r_x1, r_x2 = x1_0, x2_0
    r_outs = []
    for t in range(T):
        r_o, r_x1, r_x2 = reference_forward(xs[t], r_x1, r_x2, params,
                                            binde1, binde2, binde3, binde4)
        r_outs.append(r_o)
    r_outs = jnp.stack(r_outs, axis=0)

    assert outs.shape == (T, batch, SIZE_OUT)
    assert jnp.allclose(outs, r_outs, **tol)
    assert jnp.allclose(x1_f, r_x1, **tol)
    assert jnp.allclose(x2_f, r_x2, **tol)

    print("KERNEL_OK")
</pallas_src>

<mosaic_0001>
module attributes {stable_mosaic.version = 11 : i64} {
  func.func @esn_seq_kernel(%arg0: i32, %arg1: memref<1x2x16xf32, #tpu.memory_space<vmem>>, %arg2: memref<2x16xf32, #tpu.memory_space<vmem>>, %arg3: memref<2x16xf32, #tpu.memory_space<vmem>>, %arg4: memref<16x32xf32, #tpu.memory_space<vmem>>, %arg5: memref<16x32xf32, #tpu.memory_space<vmem>>, %arg6: memref<16x32xf32, #tpu.memory_space<vmem>>, %arg7: memref<1x32xf32, #tpu.memory_space<vmem>>, %arg8: memref<16x6xf32, #tpu.memory_space<vmem>>, %arg9: memref<1x2x6xf32, #tpu.memory_space<vmem>>, %arg10: memref<2x16xf32, #tpu.memory_space<vmem>>, %arg11: memref<2x16xf32, #tpu.memory_space<vmem>>, %arg12: memref<2x16xf32, #tpu.memory_space<vmem>>, %arg13: memref<2x16xf32, #tpu.memory_space<vmem>>) attributes {dimension_semantics = [#tpu.dimension_semantics<arbitrary>], iteration_bounds = array<i64: 1>, scalar_prefetch = 0 : i64, scratch_operands = 2 : i64, tpu.core_type = #tpu.core_type<tc>, window_params = [{transform_indices = @transform_0, window_bounds = array<i64: 1, 2, 16>}, {pipeline_mode = #tpu.pipeline_mode<synchronous>, transform_indices = @transform_1, window_bounds = array<i64: 2, 16>}, {pipeline_mode = #tpu.pipeline_mode<synchronous>, transform_indices = @transform_2, window_bounds = array<i64: 2, 16>}, {pipeline_mode = #tpu.pipeline_mode<synchronous>, transform_indices = @transform_3, window_bounds = array<i64: 16, 32>}, {pipeline_mode = #tpu.pipeline_mode<synchronous>, transform_indices = @transform_4, window_bounds = array<i64: 16, 32>}, {pipeline_mode = #tpu.pipeline_mode<synchronous>, transform_indices = @transform_5, window_bounds = array<i64: 16, 32>}, {pipeline_mode = #tpu.pipeline_mode<synchronous>, transform_indices = @transform_6, window_bounds = array<i64: 1, 32>}, {pipeline_mode = #tpu.pipeline_mode<synchronous>, transform_indices = @transform_7, window_bounds = array<i64: 16, 6>}, {transform_indices = @transform_8, window_bounds = array<i64: 1, 2, 6>}, {pipeline_mode = #tpu.pipeline_mode<synchronous>, transform_indices = @transform_9, window_bounds = array<i64: 2, 16>}, {pipeline_mode = #tpu.pipeline_mode<synchronous>, transform_indices = @transform_10, window_bounds = array<i64: 2, 16>}]} {
    %c0_i32 = arith.constant 0 : i32
    %0 = arith.cmpi eq, %arg0, %c0_i32 : i32
    %1 = arith.extui %0 : i1 to i32
    %c0_i32_0 = arith.constant 0 : i32
    %2 = arith.cmpi ne, %1, %c0_i32_0 : i32
    scf.if %2 {
      %c0_28 = arith.constant 0 : index
      %c0_29 = arith.constant 0 : index
      %35 = vector.load %arg2[%c0_28, %c0_29] : memref<2x16xf32, #tpu.memory_space<vmem>>, vector<2x16xf32>
      %c0_30 = arith.constant 0 : index
      %c0_31 = arith.constant 0 : index
      %36 = vector.load %arg12[%c0_30, %c0_31] : memref<2x16xf32, #tpu.memory_space<vmem>>, vector<2x16xf32>
      tpu.vector_store %arg12[%c0_30, %c0_31], %35 {strides = array<i32>} : memref<2x16xf32, #tpu.memory_space<vmem>>, vector<2x16xf32>,
      %c0_32 = arith.constant 0 : index
      %c0_33 = arith.constant 0 : index
      %37 = vector.load %arg3[%c0_32, %c0_33] : memref<2x16xf32, #tpu.memory_space<vmem>>, vector<2x16xf32>
      %c0_34 = arith.constant 0 : index
      %c0_35 = arith.constant 0 : index
      %38 = vector.load %arg13[%c0_34, %c0_35] : memref<2x16xf32, #tpu.memory_space<vmem>>, vector<2x16xf32>
      tpu.vector_store %arg13[%c0_34, %c0_35], %37 {strides = array<i32>} : memref<2x16xf32, #tpu.memory_space<vmem>>, vector<2x16xf32>,
    } else {
    }
    %c0 = arith.constant 0 : index
    %c0_1 = arith.constant 0 : index
    %3 = vector.load %arg4[%c0, %c0_1] : memref<16x32xf32, #tpu.memory_space<vmem>>, vector<16x32xf32>
    %c0_2 = arith.constant 0 : index
    %c0_3 = arith.constant 0 : index
    %4 = vector.load %arg5[%c0_2, %c0_3] : memref<16x32xf32, #tpu.memory_space<vmem>>, vector<16x32xf32>
    %c0_4 = arith.constant 0 : index
    %c0_5 = arith.constant 0 : index
    %5 = vector.load %arg6[%c0_4, %c0_5] : memref<16x32xf32, #tpu.memory_space<vmem>>, vector<16x32xf32>
    %c0_6 = arith.constant 0 : index
    %c0_7 = arith.constant 0 : index
    %6 = vector.load %arg8[%c0_6, %c0_7] : memref<16x6xf32, #tpu.memory_space<vmem>>, vector<16x6xf32>
    %c0_8 = arith.constant 0 : index
    %c0_9 = arith.constant 0 : index
    %7 = vector.load %arg7[%c0_8, %c0_9] : memref<1x32xf32, #tpu.memory_space<vmem>>, vector<1x32xf32>
    %8 = vector.shape_cast %7 : vector<1x32xf32> to vector<1x32xf32>
    %9 = vector.broadcast %8 : vector<1x32xf32> to vector<2x32xf32>
    %c0_10 = arith.constant 0 : index
    %c0_11 = arith.constant 0 : index
    %10 = vector.load %arg12[%c0_10, %c0_11] : memref<2x16xf32, #tpu.memory_space<vmem>>, vector<2x16xf32>
    %c0_12 = arith.constant 0 : index
    %c0_13 = arith.constant 0 : index
    %11 = vector.load %arg13[%c0_12, %c0_13] : memref<2x16xf32, #tpu.memory_space<vmem>>, vector<2x16xf32>
    %c0_i32_14 = arith.constant 0 : i32
    %12 = arith.index_cast %c0_i32_14 : i32 to index
    %c0_15 = arith.constant 0 : index
    %c0_16 = arith.constant 0 : index
    %13 = vector.load %arg1[%12, %c0_15, %c0_16] : memref<1x2x16xf32, #tpu.memory_space<vmem>>, vector<1x2x16xf32>
    %14 = vector.shape_cast %13 : vector<1x2x16xf32> to vector<2x16xf32>
    %cst = arith.constant dense<0.000000e+00> : vector<2x32xf32>
    %15 = tpu.matmul %14, %3, %cst {dimension_numbers = #tpu.dot_dimension_numbers<[1], [0], [0], [1], [0, 0, 1, 1], [], []>} : vector<2x16xf32>, vector<16x32xf32>, vector<2x32xf32> -> vector<2x32xf32>
    %cst_17 = arith.constant dense<0.000000e+00> : vector<2x32xf32>
    %16 = tpu.matmul %10, %4, %cst_17 {dimension_numbers = #tpu.dot_dimension_numbers<[1], [0], [0], [1], [0, 0, 1, 1], [], []>} : vector<2x16xf32>, vector<16x32xf32>, vector<2x32xf32> -> vector<2x32xf32>
    %17 = arith.addf %15, %16 : vector<2x32xf32>
    %cst_18 = arith.constant dense<0.000000e+00> : vector<2x32xf32>
    %18 = tpu.matmul %11, %5, %cst_18 {dimension_numbers = #tpu.dot_dimension_numbers<[1], [0], [0], [1], [0, 0, 1, 1], [], []>} : vector<2x16xf32>, vector<16x32xf32>, vector<2x32xf32> -> vector<2x32xf32>
    %19 = arith.addf %17, %18 : vector<2x32xf32>
    %20 = arith.addf %19, %9 : vector<2x32xf32>
    %21 = vector.extract_strided_slice %20 {offsets = [0, 0], sizes = [2, 16], strides = [1, 1]} : vector<2x32xf32> to vector<2x16xf32>
    %22 = math.tanh %21 : vector<2x16xf32>
    %23 = vector.extract_strided_slice %20 {offsets = [0, 16], sizes = [2, 16], strides = [1, 1]} : vector<2x32xf32> to vector<2x16xf32>
    %24 = math.tanh %23 : vector<2x16xf32>
    %cst_19 = arith.constant dense<0.000000e+00> : vector<2x6xf32>
    %25 = tpu.matmul %24, %6, %cst_19 {dimension_numbers = #tpu.dot_dimension_numbers<[1], [0], [0], [1], [0, 0, 1, 1], [], []>} : vector<2x16xf32>, vector<16x6xf32>, vector<2x6xf32> -> vector<2x6xf32>
    %26 = arith.index_cast %c0_i32_14 : i32 to index
    %c0_20 = arith.constant 0 : index
    %c0_21 = arith.constant 0 : index
    %27 = vector.load %arg9[%26, %c0_20, %c0_21] : memref<1x2x6xf32, #tpu.memory_space<vmem>>, vector<1x2x6xf32>
    %28 = vector.shape_cast %27 : vector<1x2x6xf32> to vector<2x6xf32>
    %29 = vector.shape_cast %25 : vector<2x6xf32> to vector<1x2x6xf32>
    tpu.vector_store %arg9[%26, %c0_20, %c0_21], %29 {strides = array<i32>} : memref<1x2x6xf32, #tpu.memory_space<vmem>>, vector<1x2x6xf32>,
    %c1_i32 = arith.constant 1 : i32
    %c0_22 = arith.constant 0 : index
    %c0_23 = arith.constant 0 : index
    %30 = vector.load %arg12[%c0_22, %c0_23] : memref<2x16xf32, #tpu.memory_space<vmem>>, vector<2x16xf32>
    tpu.vector_store %arg12[%c0_22, %c0_23], %22 {strides = array<i32>} : memref<2x16xf32, #tpu.memory_space<vmem>>, vector<2x16xf32>,
    %c0_24 = arith.constant 0 : index
    %c0_25 = arith.constant 0 : index
    %31 = vector.load %arg13[%c0_24, %c0_25] : memref<2x16xf32, #tpu.memory_space<vmem>>, vector<2x16xf32>
    tpu.vector_store %arg13[%c0_24, %c0_25], %24 {strides = array<i32>} : memref<2x16xf32, #tpu.memory_space<vmem>>, vector<2x16xf32>,
    %c0_i32_26 = arith.constant 0 : i32
    %32 = arith.cmpi eq, %arg0, %c0_i32_26 : i32
    %33 = arith.extui %32 : i1 to i32
    %c0_i32_27 = arith.constant 0 : i32
    %34 = arith.cmpi ne, %33, %c0_i32_27 : i32
    scf.if %34 {
      %c0_28 = arith.constant 0 : index
      %c0_29 = arith.constant 0 : index
      %35 = vector.load %arg10[%c0_28, %c0_29] : memref<2x16xf32, #tpu.memory_space<vmem>>, vector<2x16xf32>
      tpu.vector_store %arg10[%c0_28, %c0_29], %22 {strides = array<i32>} : memref<2x16xf32, #tpu.memory_space<vmem>>, vector<2x16xf32>,
      %c0_30 = arith.constant 0 : index
      %c0_31 = arith.constant 0 : index
      %36 = vector.load %arg11[%c0_30, %c0_31] : memref<2x16xf32, #tpu.memory_space<vmem>>, vector<2x16xf32>
      tpu.vector_store %arg11[%c0_30, %c0_31], %24 {strides = array<i32>} : memref<2x16xf32, #tpu.memory_space<vmem>>, vector<2x16xf32>,
    } else {
    }
    return
  }
  func.func @transform_0(%arg0: i32) -> (i32, i32, i32) {
    %c0_i32 = arith.constant 0 : i32
    %c0_i32_0 = arith.constant 0 : i32
    %c0_i32_1 = arith.constant 0 : i32
    return %arg0, %c0_i32, %c0_i32_0 : i32, i32, i32
  }
  func.func @transform_1(%arg0: i32) -> (i32, i32) {
    %c0_i32 = arith.constant 0 : i32
    %c0_i32_0 = arith.constant 0 : i32
    %c0_i32_1 = arith.constant 0 : i32
    return %c0_i32, %c0_i32_0 : i32, i32
  }
  func.func @transform_2(%arg0: i32) -> (i32, i32) {
    %c0_i32 = arith.constant 0 : i32
    %c0_i32_0 = arith.constant 0 : i32
    %c0_i32_1 = arith.constant 0 : i32
    return %c0_i32, %c0_i32_0 : i32, i32
  }
  func.func @transform_3(%arg0: i32) -> (i32, i32) {
    %c0_i32 = arith.constant 0 : i32
    %c0_i32_0 = arith.constant 0 : i32
    %c0_i32_1 = arith.constant 0 : i32
    return %c0_i32, %c0_i32_0 : i32, i32
  }
  func.func @transform_4(%arg0: i32) -> (i32, i32) {
    %c0_i32 = arith.constant 0 : i32
    %c0_i32_0 = arith.constant 0 : i32
    %c0_i32_1 = arith.constant 0 : i32
    return %c0_i32, %c0_i32_0 : i32, i32
  }
  func.func @transform_5(%arg0: i32) -> (i32, i32) {
    %c0_i32 = arith.constant 0 : i32
    %c0_i32_0 = arith.constant 0 : i32
    %c0_i32_1 = arith.constant 0 : i32
    return %c0_i32, %c0_i32_0 : i32, i32
  }
  func.func @transform_6(%arg0: i32) -> (i32, i32) {
    %c0_i32 = arith.constant 0 : i32
    %c0_i32_0 = arith.constant 0 : i32
    %c0_i32_1 = arith.constant 0 : i32
    return %c0_i32, %c0_i32_0 : i32, i32
  }
  func.func @transform_7(%arg0: i32) -> (i32, i32) {
    %c0_i32 = arith.constant 0 : i32
    %c0_i32_0 = arith.constant 0 : i32
    %c0_i32_1 = arith.constant 0 : i32
    return %c0_i32, %c0_i32_0 : i32, i32
  }
  func.func @transform_8(%arg0: i32) -> (i32, i32, i32) {
    %c0_i32 = arith.constant 0 : i32
    %c0_i32_0 = arith.constant 0 : i32
    %c0_i32_1 = arith.constant 0 : i32
    return %arg0, %c0_i32, %c0_i32_0 : i32, i32, i32
  }
  func.func @transform_9(%arg0: i32) -> (i32, i32) {
    %c0_i32 = arith.constant 0 : i32
    %c0_i32_0 = arith.constant 0 : i32
    %c0_i32_1 = arith.constant 0 : i32
    return %c0_i32, %c0_i32_0 : i32, i32
  }
  func.func @transform_10(%arg0: i32) -> (i32, i32) {
    %c0_i32 = arith.constant 0 : i32
    %c0_i32_0 = arith.constant 0 : i32
    %c0_i32_1 = arith.constant 0 : i32
    return %c0_i32, %c0_i32_0 : i32, i32
  }
}

</mosaic_0001>

<bundles_post_ra>
// kernel: tpu_custom_call.1
= control target key start
LH: loop header
LB: loop body
LE: loop exit
PB: predicated region body
PF: predicated region fallthrough
CT: control target
= control target key end

     0   :  { %16 = vsyncpa [#allocation5], 0  ;;  %s838_s0 = inlined_call_operand.vmem [shape: f32[1,2,16], index: 0, kind: input, shape index: {}]   ;;  %s839_s1 = inlined_call_operand.hbm [shape: f32[2,16], index: 1, kind: input, shape index: {}]   ;;  %s840_s2 = inlined_call_operand.hbm [shape: f32[2,16], index: 2, kind: input, shape index: {}]   ;;  %s841_s3 = inlined_call_operand.vmem [shape: f32[16,32], index: 3, kind: input, shape index: {}]   ;;  %s842_s4 = inlined_call_operand.vmem [shape: f32[16,32], index: 4, kind: input, shape index: {}]   ;;  %s843_s5 = inlined_call_operand.hbm [shape: f32[16,32], index: 5, kind: input, shape index: {}]   ;;  %s844_s6 = inlined_call_operand.vmem [shape: f32[1,32], index: 6, kind: input, shape index: {}]   ;;  %s845_s7 = inlined_call_operand.vmem [shape: f32[16,6], index: 7, kind: input, shape index: {}]   ;;  %s846_s8 = inlined_call_operand.hbm [shape: f32[1,2,6], index: 8, kind: output, shape index: {0}]   ;;  %s847_s9 = inlined_call_operand.hbm [shape: f32[2,16], index: 9, kind: output, shape index: {1}]   ;;  %s848_s10 = inlined_call_operand.hbm [shape: f32[2,16], index: 10, kind: output, shape index: {2}]  }
   0x1   :  { %17 = vsyncpa [#allocation8], 0 }
   0x2   :  { %18 = vsyncpa [#allocation6], 0 }
   0x3   :  { %19 = vsyncpa [#allocation12], 0  ;;  %s661_s13 = smov [#allocation7]   ;;  %s662_s15 = smov [#allocation4]  }
   0x4   :  { %s38_s14 = sshll.u32 %s661_s13, 4  ;;  %s28_s16 = sshll.u32 %s662_s15, 4  ;;  %s39_s14 = int_to_ptr.vmem [resolvable:$true] %s38_s14  ;;  %s29_s16 = int_to_ptr.vmem [resolvable:$true] %s28_s16 }
   0x5   :  { %s521_s19 = scalar_lea.hbm %s840_s2, 32 }
   0x6   :  { %p522_p0 = scmp.ne.s32.totalorder %s840_s2, %s521_s19  ;;  %p525_p1 = scmp.lt.u32.totalorder %s521_s19, %s840_s2 }
   0x8   :  { %p527_p2 = pnand %p525_p1, %p522_p0 }
   0xa   :  { %530 = shalt.err (!%p527_p2)
}
   0xb   :  { %s531_s24 = scalar_lea.vmem %s39_s14, 32  ;;  %p536_p4 = scmp.lt.s32.totalorder %s39_s14, %s39_s14 }
   0xc   :  { %p532_p3 = scmp.ne.s32.totalorder %s39_s14, %s531_s24  ;;  %p537_p5 = scmp.lt.s32.totalorder %s531_s24, %s531_s24 }
   0xe   :  { %p538_p6 = por %p537_p5, %p536_p4 }
  0x10   :  { %p539_p7 = pnand %p538_p6, %p532_p3 }
  0x12   :  { %542 = shalt.err (!%p539_p7)
}
  0x13   :  { %41 = dma.hbm_to_vmem [thread:$0]  %s840_s2, 32, %s39_s14, [#allocation8]  }
  0x14   :  { %s543_s29 = scalar_lea.hbm %s839_s1, 32 }
  0x15   :  { %p544_p8 = scmp.ne.s32.totalorder %s839_s1, %s543_s29  ;;  %p547_p9 = scmp.lt.u32.totalorder %s543_s29, %s839_s1 }
  0x17   :  { %p549_p10 = pnand %p547_p9, %p544_p8 }
  0x19   :  { %552 = shalt.err (!%p549_p10)
}
  0x1a   :  { %s553_s15 = scalar_lea.vmem %s29_s16, 32  ;;  %p558_p12 = scmp.lt.s32.totalorder %s29_s16, %s29_s16 }
  0x1b   :  { %p554_p11 = scmp.ne.s32.totalorder %s29_s16, %s553_s15  ;;  %p559_p13 = scmp.lt.s32.totalorder %s553_s15, %s553_s15 }
  0x1d   :  { %p560_p0 = por %p559_p13, %p558_p12 }
  0x1f   :  { %p561_p1 = pnand %p560_p0, %p554_p11 }
  0x21   :  { %564 = shalt.err (!%p561_p1)
}
  0x22   :  { %31 = dma.hbm_to_vmem [thread:$0]  %s839_s1, 32, %s29_s16, [#allocation5]  }
  0x23   :  { %s663_s17 = smov [#allocation9]   ;;  %s565_s21 = scalar_lea.hbm %s843_s5, 256 }
  0x24   :  { %s51_s18 = sshll.u32 %s663_s17, 4  ;;  %p566_p2 = scmp.ne.s32.totalorder %s843_s5, %s565_s21  ;;  %s52_s18 = int_to_ptr.vmem [resolvable:$true] %s51_s18 }
  0x25   :  { %p569_p3 = scmp.lt.u32.totalorder %s565_s21, %s843_s5 }
  0x27   :  { %p571_p4 = pnand %p569_p3, %p566_p2 }
  0x29   :  { %574 = shalt.err (!%p571_p4)
}
  0x2a   :  { %s575_s26 = scalar_lea.vmem %s52_s18, 256  ;;  %p580_p6 = scmp.lt.s32.totalorder %s52_s18, %s52_s18 }
  0x2b   :  { %p576_p5 = scmp.ne.s32.totalorder %s52_s18, %s575_s26  ;;  %p581_p7 = scmp.lt.s32.totalorder %s575_s26, %s575_s26 }
  0x2d   :  { %p582_p8 = por %p581_p7, %p580_p6 }
  0x2f   :  { %p583_p9 = pnand %p582_p8, %p576_p5 }
  0x31   :  { %586 = shalt.err (!%p583_p9)
}
  0x32   :  { %s664_s1 = smov 128   ;;  %s665_s16 = smov 8  }
  0x33   :  { %57 = dma.hbm_to_vmem [thread:$0]  %s843_s5, 256, %s52_s18, [#allocation8], %s664_s1, %s664_s1, %s665_s16  }
  0x34   :  { %653 = dma.done.wait [#allocation5], 32  }
  0x35   :  { %654 = vsyncadd [#allocation5], 4294967264 }
  0x36   :  { %655 = dma.done.wait [#allocation8], 288  }
  0x37   :  { %656 = vsyncadd [#allocation8], 4294967008  ;;  %v666_v0 = vmov 0.0|0.0   ;;  %vm667_vm0 = vmmov 0   ;;  %v668_v1 = vmov 0.0   ;;  %vm76_vm1 = vcmask 123904  }
  0x38   :  { %495 = vmatprep.subr.bf16.mxu0 %v666_v0  ;;  %498 = vmatprep.subr.bf16.mxu1 %v666_v0  ;;  %v82_v2 = vld [vmem:[%s842_s4] sm:$0xff]  ;;  %v83_v3 = vld [vmem:[%s842_s4 + $0x8] sm:$0xff]  ;;  %vm98_vm2 = vcmask 130048   ;;  %v85_v12 = vld [vmem:[#allocation9 + $0x8] sm:$0xff] }
  0x39   :  { %471 = vmatprep.mubr.msk.f32.mxu0 %vm667_vm0, %v668_v1  ;;  %478 = vmatprep.mubr.msk.f32.mxu1 %vm667_vm0, %v668_v1  ;;  %v80_v4 = vld [vmem:[%s841_s3] sm:$0xff]  ;;  %v496_v5 = vpack.c.bf16 %v83_v3, %v82_v2  ;;  %v81_v6 = vld [vmem:[%s841_s3 + $0x8] sm:$0xff] }
  0x3a   :  { %v75_v7 = vld [vmem:[#allocation4] sm:$0x3]  ;;  %v499_v8 = vpack.c.bf16 %v81_v6, %v80_v4  ;;  %v78_v9 = vld [vmem:[#allocation7] sm:$0x3]  ;;  %v97_v10 = vld [vmem:[%s838_s0] sm:$0x3] }
  0x3b   :  { %77 = vst.msk [vmem:[#allocation2] sm:$0x3] %vm76_vm1, %v75_v7  ;;  %497 = vmatpush3.bf16.msra.mxu0 %v496_v5  ;;  %79 = vst.msk [vmem:[#allocation3] sm:$0x3] %vm76_vm1, %v78_v9  ;;  %v84_v11 = vld [vmem:[#allocation9] sm:$0xff]  ;;  %v86_v16 = vld [vmem:[%s845_s7] sm:$0xff] }
  0x3c   :  { %500 = vmatpush3.bf16.msra.mxu1 %v499_v8  ;;  %501 = vmatprep.subr.bf16.mxu0 %v666_v0  ;;  %v502_v13 = vpack.c.bf16 %v85_v12, %v84_v11  ;;  %v87_v17 = vld [vmem:[%s845_s7 + $0x8] sm:$0xff]  ;;  %v450_v24 = vld [vmem:[%s844_s6] ss:$0 sm:$0xff]  ;;  %s669_s7 = smov 112   ;;  %s670_s6 = smov [#allocation11]  }
  0x3d   :  { %504 = vmatprep.subr.bf16.mxu1 %v666_v0  ;;  %v505_v18 = vpack.c.bf16 %v87_v17, %v86_v16  ;;  %s423_s21 = sshll.u32 %s670_s6, 4  ;;  %s424_s21 = int_to_ptr.vmem [resolvable:$true] %s423_s21 }
  0x3e   :  { %s587_s22 = scalar_lea.vmem %s424_s21, 32  ;;  %p592_p11 = scmp.lt.s32.totalorder %s424_s21, %s424_s21 }
  0x3f   :  { %479 = vmatmul.mubr.msk.f32.vlgmr.msra.gmra.mrb[0].mxu1 %vm98_vm2, %v97_v10  ;;  %p588_p10 = scmp.ne.s32.totalorder %s424_s21, %s587_s22  ;;  %p593_p12 = scmp.lt.s32.totalorder %s587_s22, %s587_s22 }
  0x40   :  { %492 = vmatprep.mubr.msk.f32.mxu1 %vm667_vm0, %v668_v1  ;;  %506 = vmatpush3.bf16.msra.mxu1 %v505_v18 }
  0x41   :  { %p594_p13 = por %p593_p12, %p592_p11 }
  0x42   :  { %v95_v14 = vld [vmem:[#allocation2] sm:$0x3]  ;;  %v96_v15 = vld [vmem:[#allocation3] sm:$0x3] }
  0x43   :  { %472 = vmatmul.mubr.msk.f32.vlgmr.msra.gmra.mrb[0].mxu0 %vm98_vm2, %v95_v14  ;;  %p595_p0 = pnand %p594_p13, %p588_p10 }
  0x44   :  { %503 = vmatpush3.bf16.msra.mxu0 %v502_v13  ;;  %485 = vmatprep.mubr.msk.f32.mxu0 %vm667_vm0, %v668_v1 }
  0x47   :  { %486 = vmatmul.mubr.msk.f32.vlgmr.msra.gmra.mrb[2].mxu0 %vm98_vm2, %v96_v15 }
 0x112   :  { %v241_v19 = vpop.f32.mrb[0].mxu1 }
 0x113   :  { %v480_v20 = vpop.f32.mrb[1].mxu1 }
 0x116   :  { %v168_v21 = vpop.f32.mrb[0].mxu0 }
 0x117   :  { %v242_v22 = vadd.f32 %v241_v19, %v168_v21  ;;  %v473_v23 = vpop.f32.mrb[1].mxu0 }
 0x11a   :  { %v314_v25 = vpop.f32.mrb[2].mxu0 }
 0x11b   :  { %v318_v26 = vadd.f32 %v314_v25, %v242_v22  ;;  %v487_v27 = vpop.f32.mrb[3].mxu0 }
 0x11d   :  { %v319_v28 = vadd.f32 %v450_v24, %v318_v26 }
 0x11f   :  { %519 = vtanh.f32 %v319_v28 }
 0x129   :  { %v520_v29 = vpop.eup %519 }
 0x12a   :  { %399 = vst.msk [vmem:[#allocation2] sm:$0x3] %vm76_vm1, %v520_v29  ;;  %405 = vst.msk [vmem:[#allocation11] sm:$0x3] %vm76_vm1, %v520_v29  ;;  %322 = vrot.lane.b32.xlu0 %v520_v29, %s669_s7 }
 0x19c   :  { %v323_v30 = vpop.permute.xlu0 %322 }
 0x19d   :  { %401 = vst.msk [vmem:[#allocation3] sm:$0x3] %vm76_vm1, %v323_v30  ;;  %406 = vst.msk [vmem:[#allocation13] sm:$0x3] %vm76_vm1, %v323_v30  ;;  %493 = vmatmul.mubr.msk.f32.vlgmr.msra.gmra.mrb[2].mxu1 %vm98_vm2, %v323_v30 }
 0x19e   :  { %598 = shalt.err (!%p595_p0)
}
 0x19f   :  { %s599_s25 = scalar_lea.hbm %s847_s9, 32 }
 0x1a0   :  { %p600_p1 = scmp.ne.s32.totalorder %s847_s9, %s599_s25  ;;  %p603_p2 = scmp.lt.u32.totalorder %s599_s25, %s847_s9 }
 0x1a2   :  { %p605_p3 = pnand %p603_p2, %p600_p1 }
 0x1a4   :  { %608 = shalt.err (!%p605_p3)
}
 0x1a5   :  { %426 = dma.vmem_to_hbm [thread:$0]  %s424_s21, 32, %s847_s9, [#allocation12]  }
 0x1a6   :  { %s671_s30 = smov [#allocation13]  }
 0x1a7   :  { %s433_s11 = sshll.u32 %s671_s30, 4  ;;  %s434_s11 = int_to_ptr.vmem [resolvable:$true] %s433_s11 }
 0x1a8   :  { %s609_s5 = scalar_lea.vmem %s434_s11, 32  ;;  %p614_p5 = scmp.lt.s32.totalorder %s434_s11, %s434_s11 }
 0x1a9   :  { %p610_p4 = scmp.ne.s32.totalorder %s434_s11, %s609_s5  ;;  %p615_p6 = scmp.lt.s32.totalorder %s609_s5, %s609_s5 }
 0x1ab   :  { %p616_p7 = por %p615_p6, %p614_p5 }
 0x1ad   :  { %p617_p8 = pnand %p616_p7, %p610_p4 }
 0x1af   :  { %620 = shalt.err (!%p617_p8)
}
 0x1b0   :  { %s621_s15 = scalar_lea.hbm %s848_s10, 32 }
 0x1b1   :  { %p622_p9 = scmp.ne.s32.totalorder %s848_s10, %s621_s15  ;;  %p625_p10 = scmp.lt.u32.totalorder %s621_s15, %s848_s10 }
 0x1b3   :  { %p627_p11 = pnand %p625_p10, %p622_p9 }
 0x1b5   :  { %630 = shalt.err (!%p627_p11)
}
 0x1b6   :  { %436 = dma.vmem_to_hbm [thread:$0]  %s434_s11, 32, %s848_s10, [#allocation12]   ;;  %vm396_vm3 = vcmask 41984  }
 0x1b7   :  { %s672_s0 = smov [#allocation10]  }
 0x1b8   :  { %s413_s18 = sshll.u32 %s672_s0, 4  ;;  %s414_s18 = int_to_ptr.vmem [resolvable:$true] %s413_s18 }
 0x1b9   :  { %s631_s19 = scalar_lea.vmem %s414_s18, 32  ;;  %p636_p13 = scmp.lt.s32.totalorder %s414_s18, %s414_s18 }
 0x1ba   :  { %p632_p12 = scmp.ne.s32.totalorder %s414_s18, %s631_s19  ;;  %p637_p0 = scmp.lt.s32.totalorder %s631_s19, %s631_s19 }
 0x1bc   :  { %p638_p1 = por %p637_p0, %p636_p13 }
 0x1be   :  { %p639_p2 = pnand %p638_p1, %p632_p12 }
 0x270   :  { %v392_v31 = vpop.f32.mrb[2].mxu1 }
 0x271   :  { %v494_v32 = vpop.f32.mrb[3].mxu1  ;;  %397 = vst.msk [vmem:[#allocation10] sm:$0x3] %vm396_vm3, %v392_v31 }
 0x272   :  { %642 = shalt.err (!%p639_p2)
}
 0x273   :  { %s643_s6 = scalar_lea.hbm %s846_s8, 32 }
 0x274   :  { %p644_p3 = scmp.ne.s32.totalorder %s846_s8, %s643_s6  ;;  %p647_p4 = scmp.lt.u32.totalorder %s643_s6, %s846_s8 }
 0x276   :  { %p649_p5 = pnand %p647_p4, %p644_p3 }
 0x278   :  { %652 = shalt.err (!%p649_p5)
}
 0x279   :  { %416 = dma.vmem_to_hbm [thread:$0]  %s414_s18, 32, %s846_s8, [#allocation6]  }
 0x27a   :  { %657 = dma.done.wait [#allocation6], 32  }
 0x27b   :  { %658 = vsyncadd [#allocation6], 4294967264 }
 0x27c   :  { %659 = dma.done.wait [#allocation12], 64  }
 0x27d   :  { %660 = vsyncadd [#allocation12], 4294967232 }
 0x27e   :  { %446 = vsyncpa [#allocation5], 1 }
 0x27f   :  { %447 = vsyncpa [#allocation8], 1 }
 0x280   :  { %448 = vsyncpa [#allocation6], 1 }
 0x281   :  { %449 = vsyncpa [#allocation12], 1 }

</bundles_post_ra>
